<compile_context>
chip_gen: v7x
topology: tpu7x:2x2x1
jax: 0.10.0
libtpu: 0.0.40
codegen_flags: <defaults>
</compile_context>

<pallas_src>
import functools

import jax
import jax.numpy as jnp
from jax.experimental import pallas as pl
from jax.experimental.pallas import tpu as pltpu

_BN_EPS = 1e-5
_LANE = 128  # lane-dense padded feature width


def _fused_fully_nn_kernel(x_ref, gamma_ref, beta_ref, w_ref, bias_ref, o_ref,
                           *, num_layers: int):
    """Fused (BN -> Linear -> ReLU) x num_layers, everything VMEM/vreg resident.

    x_ref:     (B, 128)        padded activations (f32)
    gamma_ref: (L, 1, 128)     BN weight  (f32)
    beta_ref:  (L, 1, 128)     BN bias    (f32)
    w_ref:     (L, 128, 128)   Linear weights, pre-transposed + padded (bf16)
    bias_ref:  (L, 1, 128)     Linear bias (f32)
    o_ref:     (B, 128)        padded output (f32)
    """
    b = x_ref.shape[0]
    inv_b = 1.0 / float(b)
    h = x_ref[...].astype(jnp.float32)

    for l in range(num_layers):  # static unroll: intermediates never leave vregs
        # --- BatchNorm1d (training stats), one-pass moments -----------------
        s1 = jnp.sum(h, axis=0, keepdims=True)
        s2 = jnp.sum(h * h, axis=0, keepdims=True)
        mean = s1 * inv_b
        var = jnp.maximum(s2 * inv_b - mean * mean, 0.0)  # biased batch var
        # Collapsed affine: only 2 VPU ops on the B-sized path.
        scale = gamma_ref[l] * jax.lax.rsqrt(var + _BN_EPS)
        shift = beta_ref[l] - mean * scale
        x_hat = h * scale + shift
        # --- Linear on the MXU (bf16 operands, f32 accumulation) ------------
        y = jnp.dot(x_hat.astype(jnp.bfloat16), w_ref[l],
                    preferred_element_type=jnp.float32)
        # --- bias + ReLU (ReLU after every block, incl. the last) -----------
        h = jnp.maximum(y + bias_ref[l], 0.0)

    o_ref[...] = h.astype(o_ref.dtype)  # lane-dense (B, 128) store


def fully_nn_forward(x, params):
    """Run the fused stack.  x: (B, input_dim) f32 -> (B, num_classes) f32."""
    B, in_dim = x.shape
    num_layers = params["w"].shape[0]
    num_classes = params["num_classes"]

    # Make the input feature axis lane-dense (zero-pad up to 128).
    x_p = jnp.pad(x.astype(jnp.float32), ((0, 0), (0, _LANE - in_dim)))

    kernel = functools.partial(_fused_fully_nn_kernel, num_layers=num_layers)
    out_p = pl.pallas_call(
        kernel,
        out_shape=jax.ShapeDtypeStruct((B, _LANE), jnp.float32),
        in_specs=[
            pl.BlockSpec(memory_space=pltpu.VMEM),  # x (padded)
            pl.BlockSpec(memory_space=pltpu.VMEM),  # gamma stack
            pl.BlockSpec(memory_space=pltpu.VMEM),  # beta stack
            pl.BlockSpec(memory_space=pltpu.VMEM),  # weight stack (bf16)
            pl.BlockSpec(memory_space=pltpu.VMEM),  # bias stack
        ],
        out_specs=pl.BlockSpec(memory_space=pltpu.VMEM),
    )(x_p, params["gamma"], params["beta"], params["w"], params["bias"])

    # Slice away the lane padding in the wrapper (layout plumbing, not compute).
    return out_p[:, :num_classes]


def init_fully_nn_params(key, input_dim, hidden_dims, num_classes):
    """Deterministic params mirroring the module; returns (packed, raw).

    packed: lane-padded (to 128), layer-stacked tensors for the fused kernel
            (weights pre-transposed to (n_in, n_out) and pre-cast to bf16).
    raw:    unpadded f32 per-layer params for the pure-JAX references.
    """
    layer_sizes = [input_dim] + list(hidden_dims) + [num_classes]
    assert max(layer_sizes) <= _LANE, "this toy config assumes widths <= 128"

    gammas, betas, ws, bs, raw = [], [], [], [], []
    for n_in, n_out in zip(layer_sizes[:-1], layer_sizes[1:]):
        key, kw, kb = jax.random.split(key, 3)
        bound = 1.0 / float(n_in) ** 0.5  # PyTorch Linear-style init bound
        w = jax.random.uniform(kw, (n_in, n_out), jnp.float32, -bound, bound)
        b = jax.random.uniform(kb, (n_out,), jnp.float32, -bound, bound)
        gamma = jnp.ones((n_in,), jnp.float32)   # BatchNorm1d default weight
        beta = jnp.zeros((n_in,), jnp.float32)   # BatchNorm1d default bias
        raw.append({"gamma": gamma, "beta": beta, "w": w, "b": b})

        # Lane-dense padded copies (zero weight rows/cols, zero bias/beta,
        # gamma padding value is irrelevant since padded activations are 0).
        ws.append(jnp.zeros((_LANE, _LANE), jnp.float32).at[:n_in, :n_out].set(w))
        bs.append(jnp.zeros((1, _LANE), jnp.float32).at[0, :n_out].set(b))
        gammas.append(jnp.ones((1, _LANE), jnp.float32).at[0, :n_in].set(gamma))
        betas.append(jnp.zeros((1, _LANE), jnp.float32).at[0, :n_in].set(beta))

    packed = {
        "gamma": jnp.stack(gammas),                   # (L, 1, 128) f32
        "beta": jnp.stack(betas),                     # (L, 1, 128) f32
        "w": jnp.stack(ws).astype(jnp.bfloat16),      # (L, 128, 128) bf16
        "bias": jnp.stack(bs),                        # (L, 1, 128) f32
        "num_classes": num_classes,
    }
    return packed, raw


def _reference_forward_f32(x, raw_params):
    """Pure-JAX reference of the PyTorch module semantics, all f32."""
    out = x.astype(jnp.float32)
    for p in raw_params:
        mean = jnp.mean(out, axis=0, keepdims=True)
        var = jnp.mean((out - mean) ** 2, axis=0, keepdims=True)
        xh = (out - mean) / jnp.sqrt(var + _BN_EPS)
        xh = xh * p["gamma"][None, :] + p["beta"][None, :]
        out = jnp.maximum(xh @ p["w"] + p["b"][None, :], 0.0)
    return out


def _reference_forward_bf16_mxu(x, raw_params):
    """Reference mirroring the kernel's bf16-operand / f32-accumulate matmul."""
    out = x.astype(jnp.float32)
    for p in raw_params:
        mean = jnp.mean(out, axis=0, keepdims=True)
        var = jnp.mean((out - mean) ** 2, axis=0, keepdims=True)
        xh = (out - mean) / jnp.sqrt(var + _BN_EPS)
        xh = xh * p["gamma"][None, :] + p["beta"][None, :]
        y = jnp.dot(xh.astype(jnp.bfloat16), p["w"].astype(jnp.bfloat16),
                    preferred_element_type=jnp.float32)
        out = jnp.maximum(y + p["b"][None, :], 0.0)
    return out


if __name__ == "__main__":
    # Small shapes consistent with the module: flat per-sample features.
    batch = 8
    input_dim = 32
    hidden_dims = [64, 48]
    num_classes = 10

    key = jax.random.PRNGKey(0)
    key, kx = jax.random.split(key)
    x = jax.random.normal(kx, (batch, input_dim), jnp.float32)

    packed, raw = init_fully_nn_params(key, input_dim, hidden_dims, num_classes)

    out = fully_nn_forward(x, packed)
    out = jax.block_until_ready(out)

    assert out.shape == (batch, num_classes), out.shape

    # Tight check vs. a reference that mirrors the bf16-MXU math.
    ref_bf16 = _reference_forward_bf16_mxu(x, raw)
    assert jnp.allclose(out, ref_bf16, atol=2e-3, rtol=2e-3), \
        "mismatch vs bf16-MXU reference"

    # Loose check vs. the pure-f32 module semantics (bf16 weight quantization
    # is the only deviation, per the review's tolerance guidance).
    ref_f32 = _reference_forward_f32(x, raw)
    assert jnp.allclose(out, ref_f32, atol=3e-2, rtol=3e-2), \
        "mismatch vs f32 reference"

    print("KERNEL_OK")
</pallas_src>

<mosaic_0001>
module attributes {stable_mosaic.version = 11 : i64} {
  func.func @_fused_fully_nn_kernel(%arg0: memref<8x128xf32, #tpu.memory_space<vmem>>, %arg1: memref<3x1x128xf32, #tpu.memory_space<vmem>>, %arg2: memref<3x1x128xf32, #tpu.memory_space<vmem>>, %arg3: memref<3x128x128xbf16, #tpu.memory_space<vmem>>, %arg4: memref<3x1x128xf32, #tpu.memory_space<vmem>>, %arg5: memref<8x128xf32, #tpu.memory_space<vmem>>) attributes {dimension_semantics = [], scalar_prefetch = 0 : i64, scratch_operands = 0 : i64, tpu.core_type = #tpu.core_type<tc>} {
    %c0 = arith.constant 0 : index
    %c0_0 = arith.constant 0 : index
    %0 = vector.load %arg0[%c0, %c0_0] : memref<8x128xf32, #tpu.memory_space<vmem>>, vector<8x128xf32>
    %cst = arith.constant dense<0.000000e+00> : vector<128xf32>
    %1 = vector.multi_reduction <add>, %0, %cst [0] : vector<8x128xf32> to vector<128xf32>
    %2 = vector.shape_cast %1 : vector<128xf32> to vector<1x128xf32>
    %3 = arith.mulf %0, %0 : vector<8x128xf32>
    %cst_1 = arith.constant dense<0.000000e+00> : vector<128xf32>
    %4 = vector.multi_reduction <add>, %3, %cst_1 [0] : vector<8x128xf32> to vector<128xf32>
    %5 = vector.shape_cast %4 : vector<128xf32> to vector<1x128xf32>
    %cst_2 = arith.constant 1.250000e-01 : f32
    %6 = vector.broadcast %cst_2 : f32 to vector<1x128xf32>
    %7 = arith.mulf %2, %6 : vector<1x128xf32>
    %cst_3 = arith.constant 1.250000e-01 : f32
    %8 = vector.broadcast %cst_3 : f32 to vector<1x128xf32>
    %9 = arith.mulf %5, %8 : vector<1x128xf32>
    %10 = arith.mulf %7, %7 : vector<1x128xf32>
    %11 = arith.subf %9, %10 : vector<1x128xf32>
    %cst_4 = arith.constant 0.000000e+00 : f32
    %12 = vector.broadcast %cst_4 : f32 to vector<1x128xf32>
    %13 = arith.maximumf %11, %12 : vector<1x128xf32>
    %c0_5 = arith.constant 0 : index
    %c0_6 = arith.constant 0 : index
    %c0_7 = arith.constant 0 : index
    %14 = vector.load %arg1[%c0_5, %c0_6, %c0_7] : memref<3x1x128xf32, #tpu.memory_space<vmem>>, vector<1x1x128xf32>
    %15 = vector.shape_cast %14 : vector<1x1x128xf32> to vector<1x128xf32>
    %cst_8 = arith.constant 9.99999974E-6 : f32
    %16 = vector.broadcast %cst_8 : f32 to vector<1x128xf32>
    %17 = arith.addf %13, %16 : vector<1x128xf32>
    %18 = math.rsqrt %17 : vector<1x128xf32>
    %19 = arith.mulf %15, %18 : vector<1x128xf32>
    %c0_9 = arith.constant 0 : index
    %c0_10 = arith.constant 0 : index
    %c0_11 = arith.constant 0 : index
    %20 = vector.load %arg2[%c0_9, %c0_10, %c0_11] : memref<3x1x128xf32, #tpu.memory_space<vmem>>, vector<1x1x128xf32>
    %21 = vector.shape_cast %20 : vector<1x1x128xf32> to vector<1x128xf32>
    %22 = arith.mulf %7, %19 : vector<1x128xf32>
    %23 = arith.subf %21, %22 : vector<1x128xf32>
    %24 = vector.broadcast %19 : vector<1x128xf32> to vector<8x128xf32>
    %25 = arith.mulf %0, %24 : vector<8x128xf32>
    %26 = vector.broadcast %23 : vector<1x128xf32> to vector<8x128xf32>
    %27 = arith.addf %25, %26 : vector<8x128xf32>
    %28 = arith.truncf %27 : vector<8x128xf32> to vector<8x128xbf16>
    %c0_12 = arith.constant 0 : index
    %c0_13 = arith.constant 0 : index
    %c0_14 = arith.constant 0 : index
    %29 = vector.load %arg3[%c0_12, %c0_13, %c0_14] : memref<3x128x128xbf16, #tpu.memory_space<vmem>>, vector<1x128x128xbf16>
    %30 = vector.shape_cast %29 : vector<1x128x128xbf16> to vector<128x128xbf16>
    %cst_15 = arith.constant dense<0.000000e+00> : vector<8x128xf32>
    %31 = tpu.matmul %28, %30, %cst_15 {dimension_numbers = #tpu.dot_dimension_numbers<[1], [0], [0], [1], [0, 0, 1, 1], [], []>} : vector<8x128xbf16>, vector<128x128xbf16>, vector<8x128xf32> -> vector<8x128xf32>
    %c0_16 = arith.constant 0 : index
    %c0_17 = arith.constant 0 : index
    %c0_18 = arith.constant 0 : index
    %32 = vector.load %arg4[%c0_16, %c0_17, %c0_18] : memref<3x1x128xf32, #tpu.memory_space<vmem>>, vector<1x1x128xf32>
    %33 = vector.shape_cast %32 : vector<1x1x128xf32> to vector<1x128xf32>
    %34 = vector.broadcast %33 : vector<1x128xf32> to vector<8x128xf32>
    %35 = arith.addf %31, %34 : vector<8x128xf32>
    %cst_19 = arith.constant 0.000000e+00 : f32
    %36 = vector.broadcast %cst_19 : f32 to vector<8x128xf32>
    %37 = arith.maximumf %35, %36 : vector<8x128xf32>
    %cst_20 = arith.constant dense<0.000000e+00> : vector<128xf32>
    %38 = vector.multi_reduction <add>, %37, %cst_20 [0] : vector<8x128xf32> to vector<128xf32>
    %39 = vector.shape_cast %38 : vector<128xf32> to vector<1x128xf32>
    %40 = arith.mulf %37, %37 : vector<8x128xf32>
    %cst_21 = arith.constant dense<0.000000e+00> : vector<128xf32>
    %41 = vector.multi_reduction <add>, %40, %cst_21 [0] : vector<8x128xf32> to vector<128xf32>
    %42 = vector.shape_cast %41 : vector<128xf32> to vector<1x128xf32>
    %cst_22 = arith.constant 1.250000e-01 : f32
    %43 = vector.broadcast %cst_22 : f32 to vector<1x128xf32>
    %44 = arith.mulf %39, %43 : vector<1x128xf32>
    %cst_23 = arith.constant 1.250000e-01 : f32
    %45 = vector.broadcast %cst_23 : f32 to vector<1x128xf32>
    %46 = arith.mulf %42, %45 : vector<1x128xf32>
    %47 = arith.mulf %44, %44 : vector<1x128xf32>
    %48 = arith.subf %46, %47 : vector<1x128xf32>
    %cst_24 = arith.constant 0.000000e+00 : f32
    %49 = vector.broadcast %cst_24 : f32 to vector<1x128xf32>
    %50 = arith.maximumf %48, %49 : vector<1x128xf32>
    %c1 = arith.constant 1 : index
    %c0_25 = arith.constant 0 : index
    %c0_26 = arith.constant 0 : index
    %51 = vector.load %arg1[%c1, %c0_25, %c0_26] : memref<3x1x128xf32, #tpu.memory_space<vmem>>, vector<1x1x128xf32>
    %52 = vector.shape_cast %51 : vector<1x1x128xf32> to vector<1x128xf32>
    %cst_27 = arith.constant 9.99999974E-6 : f32
    %53 = vector.broadcast %cst_27 : f32 to vector<1x128xf32>
    %54 = arith.addf %50, %53 : vector<1x128xf32>
    %55 = math.rsqrt %54 : vector<1x128xf32>
    %56 = arith.mulf %52, %55 : vector<1x128xf32>
    %c1_28 = arith.constant 1 : index
    %c0_29 = arith.constant 0 : index
    %c0_30 = arith.constant 0 : index
    %57 = vector.load %arg2[%c1_28, %c0_29, %c0_30] : memref<3x1x128xf32, #tpu.memory_space<vmem>>, vector<1x1x128xf32>
    %58 = vector.shape_cast %57 : vector<1x1x128xf32> to vector<1x128xf32>
    %59 = arith.mulf %44, %56 : vector<1x128xf32>
    %60 = arith.subf %58, %59 : vector<1x128xf32>
    %61 = vector.broadcast %56 : vector<1x128xf32> to vector<8x128xf32>
    %62 = arith.mulf %37, %61 : vector<8x128xf32>
    %63 = vector.broadcast %60 : vector<1x128xf32> to vector<8x128xf32>
    %64 = arith.addf %62, %63 : vector<8x128xf32>
    %65 = arith.truncf %64 : vector<8x128xf32> to vector<8x128xbf16>
    %c1_31 = arith.constant 1 : index
    %c0_32 = arith.constant 0 : index
    %c0_33 = arith.constant 0 : index
    %66 = vector.load %arg3[%c1_31, %c0_32, %c0_33] : memref<3x128x128xbf16, #tpu.memory_space<vmem>>, vector<1x128x128xbf16>
    %67 = vector.shape_cast %66 : vector<1x128x128xbf16> to vector<128x128xbf16>
    %cst_34 = arith.constant dense<0.000000e+00> : vector<8x128xf32>
    %68 = tpu.matmul %65, %67, %cst_34 {dimension_numbers = #tpu.dot_dimension_numbers<[1], [0], [0], [1], [0, 0, 1, 1], [], []>} : vector<8x128xbf16>, vector<128x128xbf16>, vector<8x128xf32> -> vector<8x128xf32>
    %c1_35 = arith.constant 1 : index
    %c0_36 = arith.constant 0 : index
    %c0_37 = arith.constant 0 : index
    %69 = vector.load %arg4[%c1_35, %c0_36, %c0_37] : memref<3x1x128xf32, #tpu.memory_space<vmem>>, vector<1x1x128xf32>
    %70 = vector.shape_cast %69 : vector<1x1x128xf32> to vector<1x128xf32>
    %71 = vector.broadcast %70 : vector<1x128xf32> to vector<8x128xf32>
    %72 = arith.addf %68, %71 : vector<8x128xf32>
    %cst_38 = arith.constant 0.000000e+00 : f32
    %73 = vector.broadcast %cst_38 : f32 to vector<8x128xf32>
    %74 = arith.maximumf %72, %73 : vector<8x128xf32>
    %cst_39 = arith.constant dense<0.000000e+00> : vector<128xf32>
    %75 = vector.multi_reduction <add>, %74, %cst_39 [0] : vector<8x128xf32> to vector<128xf32>
    %76 = vector.shape_cast %75 : vector<128xf32> to vector<1x128xf32>
    %77 = arith.mulf %74, %74 : vector<8x128xf32>
    %cst_40 = arith.constant dense<0.000000e+00> : vector<128xf32>
    %78 = vector.multi_reduction <add>, %77, %cst_40 [0] : vector<8x128xf32> to vector<128xf32>
    %79 = vector.shape_cast %78 : vector<128xf32> to vector<1x128xf32>
    %cst_41 = arith.constant 1.250000e-01 : f32
    %80 = vector.broadcast %cst_41 : f32 to vector<1x128xf32>
    %81 = arith.mulf %76, %80 : vector<1x128xf32>
    %cst_42 = arith.constant 1.250000e-01 : f32
    %82 = vector.broadcast %cst_42 : f32 to vector<1x128xf32>
    %83 = arith.mulf %79, %82 : vector<1x128xf32>
    %84 = arith.mulf %81, %81 : vector<1x128xf32>
    %85 = arith.subf %83, %84 : vector<1x128xf32>
    %cst_43 = arith.constant 0.000000e+00 : f32
    %86 = vector.broadcast %cst_43 : f32 to vector<1x128xf32>
    %87 = arith.maximumf %85, %86 : vector<1x128xf32>
    %c2 = arith.constant 2 : index
    %c0_44 = arith.constant 0 : index
    %c0_45 = arith.constant 0 : index
    %88 = vector.load %arg1[%c2, %c0_44, %c0_45] : memref<3x1x128xf32, #tpu.memory_space<vmem>>, vector<1x1x128xf32>
    %89 = vector.shape_cast %88 : vector<1x1x128xf32> to vector<1x128xf32>
    %cst_46 = arith.constant 9.99999974E-6 : f32
    %90 = vector.broadcast %cst_46 : f32 to vector<1x128xf32>
    %91 = arith.addf %87, %90 : vector<1x128xf32>
    %92 = math.rsqrt %91 : vector<1x128xf32>
    %93 = arith.mulf %89, %92 : vector<1x128xf32>
    %c2_47 = arith.constant 2 : index
    %c0_48 = arith.constant 0 : index
    %c0_49 = arith.constant 0 : index
    %94 = vector.load %arg2[%c2_47, %c0_48, %c0_49] : memref<3x1x128xf32, #tpu.memory_space<vmem>>, vector<1x1x128xf32>
    %95 = vector.shape_cast %94 : vector<1x1x128xf32> to vector<1x128xf32>
    %96 = arith.mulf %81, %93 : vector<1x128xf32>
    %97 = arith.subf %95, %96 : vector<1x128xf32>
    %98 = vector.broadcast %93 : vector<1x128xf32> to vector<8x128xf32>
    %99 = arith.mulf %74, %98 : vector<8x128xf32>
    %100 = vector.broadcast %97 : vector<1x128xf32> to vector<8x128xf32>
    %101 = arith.addf %99, %100 : vector<8x128xf32>
    %102 = arith.truncf %101 : vector<8x128xf32> to vector<8x128xbf16>
    %c2_50 = arith.constant 2 : index
    %c0_51 = arith.constant 0 : index
    %c0_52 = arith.constant 0 : index
    %103 = vector.load %arg3[%c2_50, %c0_51, %c0_52] : memref<3x128x128xbf16, #tpu.memory_space<vmem>>, vector<1x128x128xbf16>
    %104 = vector.shape_cast %103 : vector<1x128x128xbf16> to vector<128x128xbf16>
    %cst_53 = arith.constant dense<0.000000e+00> : vector<8x128xf32>
    %105 = tpu.matmul %102, %104, %cst_53 {dimension_numbers = #tpu.dot_dimension_numbers<[1], [0], [0], [1], [0, 0, 1, 1], [], []>} : vector<8x128xbf16>, vector<128x128xbf16>, vector<8x128xf32> -> vector<8x128xf32>
    %c2_54 = arith.constant 2 : index
    %c0_55 = arith.constant 0 : index
    %c0_56 = arith.constant 0 : index
    %106 = vector.load %arg4[%c2_54, %c0_55, %c0_56] : memref<3x1x128xf32, #tpu.memory_space<vmem>>, vector<1x1x128xf32>
    %107 = vector.shape_cast %106 : vector<1x1x128xf32> to vector<1x128xf32>
    %108 = vector.broadcast %107 : vector<1x128xf32> to vector<8x128xf32>
    %109 = arith.addf %105, %108 : vector<8x128xf32>
    %cst_57 = arith.constant 0.000000e+00 : f32
    %110 = vector.broadcast %cst_57 : f32 to vector<8x128xf32>
    %111 = arith.maximumf %109, %110 : vector<8x128xf32>
    %c0_58 = arith.constant 0 : index
    %c0_59 = arith.constant 0 : index
    %112 = vector.load %arg5[%c0_58, %c0_59] : memref<8x128xf32, #tpu.memory_space<vmem>>, vector<8x128xf32>
    tpu.vector_store %arg5[%c0_58, %c0_59], %111 {strides = array<i32>} : memref<8x128xf32, #tpu.memory_space<vmem>>, vector<8x128xf32>,
    return
  }
}

</mosaic_0001>

<bundles_post_ra>
// kernel: tpu_custom_call.1
= control target key start
LH: loop header
LB: loop body
LE: loop exit
PB: predicated region body
PF: predicated region fallthrough
CT: control target
= control target key end

     0   :  { %10 = vsyncpa [#allocation3], 0  ;;  %s904_s0 = inlined_call_operand.hbm [shape: f32[8,128], index: 0, kind: input, shape index: {}]   ;;  %s905_s1 = inlined_call_operand.vmem [shape: f32[3,1,128], index: 1, kind: input, shape index: {}]   ;;  %s906_s2 = inlined_call_operand.vmem [shape: f32[3,1,128], index: 2, kind: input, shape index: {}]   ;;  %s907_s3 = inlined_call_operand.hbm [shape: bf16[3,128,128], index: 3, kind: input, shape index: {}]   ;;  %s908_s4 = inlined_call_operand.vmem [shape: f32[3,1,128], index: 4, kind: input, shape index: {}]   ;;  %s909_s5 = inlined_call_operand.hbm [shape: f32[8,128], index: 5, kind: output, shape index: {}]  }
   0x1   :  { %11 = vsyncpa [#allocation6], 0 }
   0x2   :  { %12 = vsyncpa [#allocation4], 0  ;;  %s759_s18 = smov [#allocation2]   ;;  %s760_s20 = smov [#allocation5]  }
   0x3   :  { %s19_s19 = sshll.u32 %s759_s18, 4  ;;  %s32_s21 = sshll.u32 %s760_s20, 4  ;;  %s20_s19 = int_to_ptr.vmem [resolvable:$true] %s19_s19  ;;  %s796_s21 = int_to_ptr.vmem [resolvable:$true] %s32_s21 }
   0x4   :  { %s687_s24 = scalar_lea.hbm %s904_s0, 128 }
   0x5   :  { %p688_p0 = scmp.ne.s32.totalorder %s904_s0, %s687_s24  ;;  %p691_p1 = scmp.lt.u32.totalorder %s687_s24, %s904_s0 }
   0x7   :  { %p693_p2 = pnand %p691_p1, %p688_p0 }
   0x9   :  { %696 = shalt.err (!%p693_p2)
}
   0xa   :  { %s697_s29 = scalar_lea.vmem %s20_s19, 128  ;;  %p702_p4 = scmp.lt.s32.totalorder %s20_s19, %s20_s19 }
   0xb   :  { %p698_p3 = scmp.ne.s32.totalorder %s20_s19, %s697_s29  ;;  %p703_p5 = scmp.lt.s32.totalorder %s697_s29, %s697_s29 }
   0xd   :  { %p704_p6 = por %p703_p5, %p702_p4 }
   0xf   :  { %p705_p7 = pnand %p704_p6, %p698_p3 }
  0x11   :  { %708 = shalt.err (!%p705_p7)
}
  0x12   :  { %22 = dma.hbm_to_vmem [thread:$0]  %s904_s0, 128, %s20_s19, [#allocation3]  }
  0x13   :  { %s709_s9 = scalar_lea.hbm %s907_s3, 3072 }
  0x14   :  { %p710_p8 = scmp.ne.s32.totalorder %s907_s3, %s709_s9  ;;  %p713_p9 = scmp.lt.u32.totalorder %s709_s9, %s907_s3 }
  0x16   :  { %p715_p10 = pnand %p713_p9, %p710_p8 }
  0x18   :  { %718 = shalt.err (!%p715_p10)
}
  0x19   :  { %s719_s14 = scalar_lea.vmem %s796_s21, 3072  ;;  %p724_p12 = scmp.lt.s32.totalorder %s796_s21, %s796_s21 }
  0x1a   :  { %p720_p11 = scmp.ne.s32.totalorder %s796_s21, %s719_s14  ;;  %p725_p13 = scmp.lt.s32.totalorder %s719_s14, %s719_s14 }
  0x1c   :  { %p726_p0 = por %p725_p13, %p724_p12 }
  0x1e   :  { %p727_p1 = pnand %p726_p0, %p720_p11 }
  0x20   :  { %730 = shalt.err (!%p727_p1)
}
  0x21   :  { %s761_s0 = smov 64   ;;  %s762_s15 = smov 4  }
  0x22   :  { %38 = dma.hbm_to_vmem [thread:$0]  %s907_s3, 3072, %s796_s21, [#allocation6], %s761_s0, %s761_s0, %s762_s15  }
  0x23   :  { %753 = dma.done.wait [#allocation3], 128  }
  0x24   :  { %754 = vsyncadd [#allocation3], 4294967168 }
  0x25   :  { %755 = dma.done.wait [#allocation6], 3072  }
  0x26   :  { %756 = vsyncadd [#allocation6], 4294964224  ;;  %v763_v0 = vmov 0.0   ;;  %vm764_vm0 = vmmov 0   ;;  %v657_v1 = vld [vmem:[#allocation5] sm:$0xff]   ;;  %v658_v2 = vld [vmem:[#allocation5 + $0x8] sm:$0xff]   ;;  %v75_v29 = vlaneseq }
  0x27   :  { %590 = vmatprep.subr.bf16.mxu0 %v763_v0  ;;  %606 = vmatprep.mubr.msk.bf16.mxu0 %vm764_vm0, %v763_v0  ;;  %v659_v3 = vld [vmem:[#allocation5 + $0x10] sm:$0xff]   ;;  %v48_v4 = vld [vmem:[#allocation2] sm:$0xff]  ;;  %v661_v10 = vld [vmem:[#allocation5 + $0x20] sm:$0xff]  }
  0x28   :  { %610 = vmatprep.subr.bf16.mxu1 %v763_v0  ;;  %626 = vmatprep.mubr.msk.bf16.mxu1 %vm764_vm0, %v763_v0  ;;  %v660_v5 = vld [vmem:[#allocation5 + $0x18] sm:$0xff]   ;;  %v49_v6 = vrot.slane %v48_v4, 4  ;;  %v55_v7 = vmul.f32 %v48_v4, %v48_v4  ;;  %v662_v15 = vld [vmem:[#allocation5 + $0x28] sm:$0xff]   ;;  %v663_v22 = vld [vmem:[#allocation5 + $0x30] sm:$0xff]   ;;  %v76_v30 = vshrl.u32 %v75_v29, 7 }
  0x29   :  { %591 = vmatpush3.bf16.msra.mxu0 %v657_v1  ;;  %v664_v26 = vld [vmem:[#allocation5 + $0x38] sm:$0xff]   ;;  %v665_v43 = vld [vmem:[#allocation5 + $0x40] sm:$0xff]   ;;  %v666_v44 = vld [vmem:[#allocation5 + $0x48] sm:$0xff]  }
  0x2a   :  { %592 = vmatprep.subr.bf16.mxu0 %v763_v0  ;;  %v50_v8 = vadd.f32 %v49_v6, %v48_v4  ;;  %v56_v9 = vrot.slane %v55_v7, 4  ;;  %v67_v31 = vld [vmem:[%s905_s1] sm:$0x1]  ;;  %v844_v32 = vsub.s32 0, %v76_v30  ;;  %611 = vmatpush3.bf16.msra.mxu1 %v665_v43  ;;  %v667_v45 = vld [vmem:[#allocation5 + $0x50] sm:$0xff]   ;;  %v669_v47 = vld [vmem:[#allocation5 + $0x60] sm:$0xff]  }
  0x2b   :  { %v71_v35 = vld [vmem:[%s906_s2] sm:$0x1]  ;;  %612 = vmatprep.subr.bf16.mxu1 %v763_v0  ;;  %v670_v48 = vld [vmem:[#allocation5 + $0x68] sm:$0xff]   ;;  %v671_v49 = vld [vmem:[#allocation5 + $0x70] sm:$0xff]  }
  0x2c   :  { %v51_v11 = vrot.slane %v50_v8, 2  ;;  %v57_v12 = vadd.f32 %v56_v9, %v55_v7  ;;  %v668_v46 = vld [vmem:[#allocation5 + $0x58] sm:$0xff]   ;;  %v677_v29 = vld [vmem:[#allocation5 + $0xa0] sm:$0xff]   ;;  %v678_v30 = vld [vmem:[#allocation5 + $0xa8] sm:$0xff]  }
  0x2d   :  { %593 = vmatpush3.bf16.msra.mxu0 %v658_v2  ;;  %v672_v50 = vld [vmem:[#allocation5 + $0x78] sm:$0xff]  }
  0x2e   :  { %594 = vmatprep.subr.bf16.mxu0 %v763_v0  ;;  %v52_v13 = vadd.f32 %v51_v11, %v50_v8  ;;  %v58_v14 = vrot.slane %v57_v12, 2  ;;  %613 = vmatpush3.bf16.msra.mxu1 %v666_v44  ;;  %v530_v51 = vld [vmem:[%s908_s4] ss:$0 sm:$0xff] }
  0x2f   :  { %614 = vmatprep.subr.bf16.mxu1 %v763_v0 }
  0x30   :  { %v53_v16 = vrot.slane %v52_v13, 1  ;;  %v59_v17 = vadd.f32 %v58_v14, %v57_v12  ;;  %v539_v14 = vld [vmem:[%s905_s1 + $0x1] sm:$0x1] }
  0x31   :  { %595 = vmatpush3.bf16.msra.mxu0 %v659_v3 }
  0x32   :  { %596 = vmatprep.subr.bf16.mxu0 %v763_v0  ;;  %v54_v18 = vadd.f32 %v53_v16, %v52_v13  ;;  %v60_v19 = vrot.slane %v59_v17, 1  ;;  %615 = vmatpush3.bf16.msra.mxu1 %v667_v45 }
  0x33   :  { %616 = vmatprep.subr.bf16.mxu1 %v763_v0 }
  0x34   :  { %v61_v20 = vadd.f32 %v60_v19, %v59_v17  ;;  %v62_v21 = vmul.f32 0.125, %v54_v18  ;;  %v540_v17 = vld [vmem:[%s906_s2 + $0x1] sm:$0x1] }
  0x35   :  { %597 = vmatpush3.bf16.msra.mxu0 %v660_v5 }
  0x36   :  { %598 = vmatprep.subr.bf16.mxu0 %v763_v0  ;;  %v63_v23 = vmul.f32 0.125, %v61_v20  ;;  %v64_v24 = vmul.f32 %v62_v21, %v62_v21  ;;  %617 = vmatpush3.bf16.msra.mxu1 %v668_v46 }
  0x37   :  { %618 = vmatprep.subr.bf16.mxu1 %v763_v0 }
  0x38   :  { %v65_v25 = vsub.f32 %v63_v23, %v64_v24 }
  0x39   :  { %599 = vmatpush3.bf16.msra.mxu0 %v661_v10 }
  0x3a   :  { %600 = vmatprep.subr.bf16.mxu0 %v763_v0  ;;  %v66_v27 = vmax.f32 %v65_v25, 0.0  ;;  %619 = vmatpush3.bf16.msra.mxu1 %v669_v47  ;;  %v673_v25 = vld [vmem:[#allocation5 + $0x80] sm:$0xff]  }
  0x3b   :  { %620 = vmatprep.subr.bf16.mxu1 %v763_v0 }
  0x3c   :  { %v68_v28 = vadd.f32 1e-05, %v66_v27  ;;  %v675_v27 = vld [vmem:[#allocation5 + $0x90] sm:$0xff]  }
  0x3d   :  { %601 = vmatpush3.bf16.msra.mxu0 %v662_v15 }
  0x3e   :  { %602 = vmatprep.subr.bf16.mxu0 %v763_v0  ;;  %681 = vrsqrt.f32 %v68_v28  ;;  %621 = vmatpush3.bf16.msra.mxu1 %v670_v48  ;;  %v676_v28 = vld [vmem:[#allocation5 + $0x98] sm:$0xff]  }
  0x3f   :  { %622 = vmatprep.subr.bf16.mxu1 %v763_v0 }
  0x41   :  { %603 = vmatpush3.bf16.msra.mxu0 %v663_v22 }
  0x42   :  { %604 = vmatprep.subr.bf16.mxu0 %v763_v0  ;;  %623 = vmatpush3.bf16.msra.mxu1 %v671_v49 }
  0x43   :  { %624 = vmatprep.subr.bf16.mxu1 %v763_v0 }
  0x45   :  { %605 = vmatpush3.bf16.msra.mxu0 %v664_v26  ;;  %v674_v26 = vld [vmem:[#allocation5 + $0x88] sm:$0xff]  }
  0x46   :  { %630 = vmatprep.subr.bf16.mxu0 %v763_v0  ;;  %625 = vmatpush3.bf16.msra.mxu1 %v672_v50 }
  0x48   :  { %v682_v33 = vpop.eup %681 }
  0x49   :  { %v70_v34 = vmul.f32 %v682_v33, %v67_v31  ;;  %v679_v31 = vld [vmem:[#allocation5 + $0xb0] sm:$0xff]   ;;  %v680_v33 = vld [vmem:[#allocation5 + $0xb8] sm:$0xff]  }
  0x4b   :  { %v72_v36 = vmul.f32 %v70_v34, %v62_v21  ;;  %v78_v37 = vrot.slane %v70_v34, %v844_v32  ;;  %v542_v34 = vld [vmem:[%s908_s4 + $0x1] ss:$0 sm:$0xff] }
  0x4d   :  { %v73_v38 = vsub.f32 %v71_v35, %v72_v36  ;;  %v80_v39 = vmul.f32 %v78_v37, %v48_v4 }
  0x4f   :  { %v85_v40 = vrot.slane %v73_v38, %v844_v32 }
  0x51   :  { %v87_v41 = vadd.f32 %v85_v40, %v80_v39 }
  0x53   :  { %v88_v42 = vpack.c.bf16 %v87_v41, %v87_v41 }
  0x55   :  { %607 = vmatmul.mubr.bf16.vlgmr.msra.gmra.mrb[0].mxu0 %v88_v42 }
  0x56   :  { %646 = vmatprep.mubr.msk.bf16.mxu0 %vm764_vm0, %v763_v0  ;;  %631 = vmatpush3.bf16.msra.mxu0 %v673_v25 }
  0x57   :  { %632 = vmatprep.subr.bf16.mxu0 %v763_v0 }
  0x5a   :  { %633 = vmatpush3.bf16.msra.mxu0 %v674_v26 }
  0x5b   :  { %634 = vmatprep.subr.bf16.mxu0 %v763_v0 }
  0x5e   :  { %635 = vmatpush3.bf16.msra.mxu0 %v675_v27 }
  0x5f   :  { %636 = vmatprep.subr.bf16.mxu0 %v763_v0 }
  0x62   :  { %637 = vmatpush3.bf16.msra.mxu0 %v676_v28 }
  0x63   :  { %638 = vmatprep.subr.bf16.mxu0 %v763_v0 }
  0x66   :  { %639 = vmatpush3.bf16.msra.mxu0 %v677_v29 }
  0x67   :  { %640 = vmatprep.subr.bf16.mxu0 %v763_v0 }
  0x6a   :  { %641 = vmatpush3.bf16.msra.mxu0 %v678_v30 }
  0x6b   :  { %642 = vmatprep.subr.bf16.mxu0 %v763_v0 }
  0x6e   :  { %643 = vmatpush3.bf16.msra.mxu0 %v679_v31 }
  0x6f   :  { %644 = vmatprep.subr.bf16.mxu0 %v763_v0 }
  0x72   :  { %645 = vmatpush3.bf16.msra.mxu0 %v680_v33 }
 0x128   :  { %v194_v52 = vpop.f32.mrb[0].mxu0 }
 0x129   :  { %v195_v53 = vadd.f32 %v530_v51, %v194_v52  ;;  %v608_v54 = vpop.f32.mrb[1].mxu0 }
 0x12a   :  { %v197_v55 = vpop.f32.mrb[2].mxu0 }
 0x12b   :  { %v200_v56 = vmax.f32 %v195_v53, 0.0  ;;  %v609_v57 = vpop.f32.mrb[3].mxu0 }
 0x12d   :  { %v201_v58 = vrot.slane %v200_v56, 4  ;;  %v207_v59 = vmul.f32 %v200_v56, %v200_v56 }
 0x12f   :  { %v202_v60 = vadd.f32 %v201_v58, %v200_v56  ;;  %v208_v61 = vrot.slane %v207_v59, 4 }
 0x131   :  { %v203_v62 = vrot.slane %v202_v60, 2  ;;  %v209_v63 = vadd.f32 %v208_v61, %v207_v59  ;;  %v551_v59 = vld [vmem:[%s905_s1 + $0x2] sm:$0x1]  ;;  %s765_s1 = smov [#allocation7]  }
 0x132   :  { %s520_s10 = sshll.u32 %s765_s1, 4  ;;  %s521_s10 = int_to_ptr.vmem [resolvable:$true] %s520_s10 }
 0x133   :  { %v204_v1 = vadd.f32 %v203_v62, %v202_v60  ;;  %v210_v2 = vrot.slane %v209_v63, 2  ;;  %v552_v62 = vld [vmem:[%s906_s2 + $0x2] sm:$0x1]  ;;  %s731_s2 = scalar_lea.vmem %s521_s10, 128  ;;  %p736_p3 = scmp.lt.s32.totalorder %s521_s10, %s521_s10 }
 0x134   :  { %p732_p2 = scmp.ne.s32.totalorder %s521_s10, %s731_s2  ;;  %p737_p4 = scmp.lt.s32.totalorder %s731_s2, %s731_s2 }
 0x135   :  { %v205_v3 = vrot.slane %v204_v1, 1  ;;  %v211_v4 = vadd.f32 %v210_v2, %v209_v63 }
 0x136   :  { %p738_p5 = por %p737_p4, %p736_p3 }
 0x137   :  { %v212_v5 = vrot.slane %v211_v4, 1  ;;  %v206_v6 = vadd.f32 %v205_v3, %v204_v1 }
 0x138   :  { %p739_p6 = pnand %p738_p5, %p732_p2 }
 0x139   :  { %v213_v7 = vadd.f32 %v212_v5, %v211_v4  ;;  %v214_v8 = vmul.f32 0.125, %v206_v6 }
 0x13b   :  { %v215_v9 = vmul.f32 0.125, %v213_v7  ;;  %v216_v10 = vmul.f32 %v214_v8, %v214_v8  ;;  %v554_v7 = vld [vmem:[%s908_s4 + $0x2] ss:$0 sm:$0xff] }
 0x13d   :  { %v217_v11 = vsub.f32 %v215_v9, %v216_v10 }
 0x13f   :  { %v218_v12 = vmax.f32 %v217_v11, 0.0 }
 0x141   :  { %v221_v13 = vadd.f32 1e-05, %v218_v12 }
 0x143   :  { %683 = vrsqrt.f32 %v221_v13 }
 0x14d   :  { %v684_v15 = vpop.eup %683 }
 0x14e   :  { %v223_v16 = vmul.f32 %v684_v15, %v539_v14 }
 0x150   :  { %v226_v18 = vmul.f32 %v223_v16, %v214_v8  ;;  %v232_v19 = vrot.slane %v223_v16, %v844_v32 }
 0x152   :  { %v227_v20 = vsub.f32 %v540_v17, %v226_v18  ;;  %v234_v21 = vmul.f32 %v232_v19, %v200_v56 }
 0x154   :  { %v239_v22 = vrot.slane %v227_v20, %v844_v32 }
 0x156   :  { %v241_v23 = vadd.f32 %v239_v22, %v234_v21 }
 0x158   :  { %v242_v24 = vpack.c.bf16 %v241_v23, %v241_v23 }
 0x15a   :  { %627 = vmatmul.mubr.bf16.vlgmr.msra.gmra.mrb[0].mxu1 %v242_v24 }
 0x22d   :  { %v350_v35 = vpop.f32.mrb[0].mxu1 }
 0x22e   :  { %v351_v36 = vadd.f32 %v542_v34, %v350_v35  ;;  %v628_v37 = vpop.f32.mrb[1].mxu1 }
 0x22f   :  { %v353_v38 = vpop.f32.mrb[2].mxu1 }
 0x230   :  { %v356_v39 = vmax.f32 %v351_v36, 0.0  ;;  %v629_v40 = vpop.f32.mrb[3].mxu1 }
 0x232   :  { %v357_v41 = vrot.slane %v356_v39, 4  ;;  %v363_v42 = vmul.f32 %v356_v39, %v356_v39 }
 0x234   :  { %v358_v43 = vadd.f32 %v357_v41, %v356_v39  ;;  %v364_v44 = vrot.slane %v363_v42, 4 }
 0x236   :  { %v359_v45 = vrot.slane %v358_v43, 2  ;;  %v365_v46 = vadd.f32 %v364_v44, %v363_v42 }
 0x238   :  { %v360_v47 = vadd.f32 %v359_v45, %v358_v43  ;;  %v366_v48 = vrot.slane %v365_v46, 2 }
 0x23a   :  { %v361_v0 = vrot.slane %v360_v47, 1  ;;  %v367_v49 = vadd.f32 %v366_v48, %v365_v46 }
 0x23c   :  { %v362_v50 = vadd.f32 %v361_v0, %v360_v47  ;;  %v368_v51 = vrot.slane %v367_v49, 1 }
 0x23e   :  { %v369_v52 = vadd.f32 %v368_v51, %v367_v49  ;;  %v370_v53 = vmul.f32 0.125, %v362_v50 }
 0x240   :  { %v371_v54 = vmul.f32 0.125, %v369_v52  ;;  %v372_v55 = vmul.f32 %v370_v53, %v370_v53 }
 0x242   :  { %v373_v56 = vsub.f32 %v371_v54, %v372_v55 }
 0x244   :  { %v374_v57 = vmax.f32 %v373_v56, 0.0 }
 0x246   :  { %v377_v58 = vadd.f32 1e-05, %v374_v57 }
 0x248   :  { %685 = vrsqrt.f32 %v377_v58 }
 0x252   :  { %v686_v60 = vpop.eup %685 }
 0x253   :  { %v379_v61 = vmul.f32 %v686_v60, %v551_v59 }
 0x255   :  { %v388_v63 = vrot.slane %v379_v61, %v844_v32  ;;  %v382_v1 = vmul.f32 %v379_v61, %v370_v53 }
 0x257   :  { %v383_v2 = vsub.f32 %v552_v62, %v382_v1  ;;  %v390_v3 = vmul.f32 %v388_v63, %v356_v39 }
 0x259   :  { %v395_v4 = vrot.slane %v383_v2, %v844_v32 }
 0x25b   :  { %v397_v5 = vadd.f32 %v395_v4, %v390_v3 }
 0x25d   :  { %v398_v6 = vpack.c.bf16 %v397_v5, %v397_v5 }
 0x25f   :  { %647 = vmatmul.mubr.bf16.vlgmr.msra.gmra.mrb[4].mxu0 %v398_v6 }
 0x332   :  { %v506_v8 = vpop.f32.mrb[4].mxu0 }
 0x333   :  { %v507_v9 = vadd.f32 %v554_v7, %v506_v8  ;;  %v648_v10 = vpop.f32.mrb[5].mxu0 }
 0x334   :  { %v509_v11 = vpop.f32.mrb[6].mxu0 }
 0x335   :  { %v512_v12 = vmax.f32 %v507_v9, 0.0  ;;  %v649_v13 = vpop.f32.mrb[7].mxu0 }
 0x337   :  { %513 = vst [vmem:[#allocation7] sm:$0xff] %v512_v12 }
 0x338   :  { %742 = shalt.err (!%p739_p6)
}
 0x339   :  { %s743_s4 = scalar_lea.hbm %s909_s5, 128 }
 0x33a   :  { %p744_p7 = scmp.ne.s32.totalorder %s909_s5, %s743_s4  ;;  %p747_p8 = scmp.lt.u32.totalorder %s743_s4, %s909_s5 }
 0x33c   :  { %p749_p9 = pnand %p747_p8, %p744_p7 }
 0x33e   :  { %752 = shalt.err (!%p749_p9)
}
 0x33f   :  { %523 = dma.vmem_to_hbm [thread:$0]  %s521_s10, 128, %s909_s5, [#allocation4]  }
 0x340   :  { %757 = dma.done.wait [#allocation4], 128  }
 0x341   :  { %758 = vsyncadd [#allocation4], 4294967168 }
 0x342   :  { %527 = vsyncpa [#allocation3], 1 }
 0x343   :  { %528 = vsyncpa [#allocation6], 1 }
 0x344   :  { %529 = vsyncpa [#allocation4], 1 }

</bundles_post_ra>
